<compile_context>
chip_gen: v6e
topology: v6e:2x2x1
jax: 0.10.0
libtpu: 0.0.40
codegen_flags: <defaults>
</compile_context>

<pallas_src>
import functools

import jax
import jax.numpy as jnp
from jax.experimental import pallas as pl
from jax.experimental.pallas import tpu as pltpu


def _transpose_conv_block_kernel(x_ref, w_ref, o_ref, *, c_blk, hw,
                                 eps=1e-5, negative_slope=0.2):
    C = c_blk
    x = x_ref[...]                                    # (C_in, HW)   lanes = HW
    w = w_ref[...]                                    # (4*C, C_in)
    # ConvTranspose2d(k=2, s=2, bias=False): one matmul, f32 accumulation on the MXU.
    y = jnp.dot(w, x, preferred_element_type=jnp.float32)        # (4*C, HW) f32

    # InstanceNorm2d stats (biased variance, affine=False) per output channel.
    # Full-tile lane-axis (XLU) reductions over HW; the 4 kernel-tap groups are
    # combined on the tiny (C, 1) vectors (rows are ordered kh, kw, oc).
    s = jnp.sum(y, axis=-1, keepdims=True)            # (4*C, 1)
    s2 = jnp.sum(y * y, axis=-1, keepdims=True)       # (4*C, 1)
    s_c = s[0:C] + s[C:2 * C] + s[2 * C:3 * C] + s[3 * C:4 * C]        # (C, 1)
    s2_c = s2[0:C] + s2[C:2 * C] + s2[2 * C:3 * C] + s2[3 * C:4 * C]   # (C, 1)
    n_elem = jnp.float32(4 * hw)
    mean = s_c / n_elem
    var = jnp.maximum(s2_c / n_elem - mean * mean, 0.0)   # guard E[x^2]-m^2 cancellation
    inv = jax.lax.rsqrt(var + eps)
    mean4 = jnp.concatenate([mean] * 4, axis=0)       # (4*C, 1)
    inv4 = jnp.concatenate([inv] * 4, axis=0)         # (4*C, 1)

    # Fused normalize + LeakyReLU: one full-width, lane-dense (unmasked) store.
    yn = (y - mean4) * inv4
    o_ref[...] = jnp.where(yn >= 0, yn, negative_slope * yn).astype(o_ref.dtype)


def transpose_conv_block(x_nchw, weight, *, c_blk=None,
                         matmul_dtype=jnp.bfloat16, eps=1e-5, negative_slope=0.2):
    """x_nchw: (N, C_in, H, W); weight: (C_in, C_out, 2, 2) (PyTorch ConvTranspose2d layout)."""
    N, C_in, H, W = x_nchw.shape
    C_in_w, C_out, KH, KW = weight.shape
    assert C_in_w == C_in and (KH, KW) == (2, 2)
    HW = H * W

    # Channel-block grid axis: InstanceNorm is per-channel, so blocks are independent.
    # Keeps per-step VMEM small and gives v7x's second TensorCore work even at N=1.
    if c_blk is None:
        c_blk = C_out
        for cand in (64, 32, 16, 8):
            if C_out % cand == 0:
                c_blk = cand
                break
    assert C_out % c_blk == 0
    n_blk = C_out // c_blk

    # Input glue: NCHW -> (N, C_in, HW) is a pure reshape -- no extra HBM transpose pass.
    x2d = x_nchw.reshape(N, C_in, HW).astype(matmul_dtype)
    # Weight glue (tiny tensor): rows ordered (oc_block, kh, kw, oc_inner), cols = C_in.
    w2d = (weight.reshape(C_in, n_blk, c_blk, 2, 2)
           .transpose(1, 3, 4, 2, 0)
           .reshape(n_blk * 4 * c_blk, C_in)
           .astype(matmul_dtype))

    kernel = functools.partial(_transpose_conv_block_kernel, c_blk=c_blk, hw=HW,
                               eps=eps, negative_slope=negative_slope)

    # Explicit VMEM budget: double-buffered x / weight / out blocks + headroom,
    # clamped so it is safe on every generation (incl. v7x's 64 MiB physical VMEM).
    itemsize = jnp.dtype(matmul_dtype).itemsize
    per_step = (2 * C_in * HW * itemsize
                + 2 * 4 * c_blk * C_in * itemsize
                + 2 * 4 * c_blk * HW * 4)
    vmem_limit = int(min(max(4 * per_step + (4 << 20), 32 << 20), 48 << 20))
    # TODO(synk): for decoder-scale shapes where per_step approaches v7x's 64 MiB VMEM,
    # switch to an HW-tiled two-pass structure (accumulate sum/sumsq over an "arbitrary"
    # HW grid axis, then normalize + store in a second lane-dense pass).

    y = pl.pallas_call(
        kernel,
        out_shape=jax.ShapeDtypeStruct((N, n_blk * 4 * c_blk, HW), jnp.float32),
        grid_spec=pltpu.PrefetchScalarGridSpec(
            num_scalar_prefetch=0,
            grid=(N, n_blk),
            in_specs=[
                pl.BlockSpec((None, C_in, HW), lambda n, j: (n, 0, 0)),
                pl.BlockSpec((4 * c_blk, C_in), lambda n, j: (j, 0)),
            ],
            out_specs=pl.BlockSpec((None, 4 * c_blk, HW), lambda n, j: (n, j, 0)),
        ),
        compiler_params=pltpu.CompilerParams(
            dimension_semantics=("parallel", "parallel"),
            vmem_limit_bytes=vmem_limit),
    )(x2d, w2d)

    # Output glue: one XLA transpose scatters the 2x2 taps into NCHW (N, C_out, 2H, 2W).
    out = (y.reshape(N, n_blk, 2, 2, c_blk, H, W)
           .transpose(0, 1, 4, 5, 2, 6, 3)
           .reshape(N, C_out, 2 * H, 2 * W))
    return out


def _reference(x_nchw, weight, eps=1e-5, slope=0.2):
    """Pure-JAX reference matching the PyTorch module semantics (f32)."""
    N, C_in, H, W = x_nchw.shape
    C_out = weight.shape[1]
    y = jnp.einsum('nchw,cokl->nohkwl', x_nchw, weight).reshape(N, C_out, 2 * H, 2 * W)
    mean = y.mean(axis=(2, 3), keepdims=True)
    var = y.var(axis=(2, 3), keepdims=True)          # biased, as InstanceNorm2d
    yn = (y - mean) * jax.lax.rsqrt(var + eps)
    return jnp.where(yn >= 0, yn, slope * yn)


if __name__ == "__main__":
    key = jax.random.PRNGKey(0)
    kx, kw = jax.random.split(key)

    N, in_chans, out_chans, H, W = 2, 4, 8, 16, 16
    x = jax.random.normal(kx, (N, in_chans, H, W), dtype=jnp.float32)
    # Deterministic synthetic ConvTranspose2d weight (PyTorch layout: (in, out, kH, kW)).
    weight = 0.2 * jax.random.normal(kw, (in_chans, out_chans, 2, 2), dtype=jnp.float32)

    ref = _reference(x, weight)

    # Full-precision path: tight correctness check.
    out_f32 = jax.block_until_ready(transpose_conv_block(x, weight, matmul_dtype=jnp.float32))
    assert out_f32.shape == (N, out_chans, 2 * H, 2 * W), out_f32.shape
    assert jnp.allclose(out_f32, ref, rtol=1e-3, atol=1e-4), \
        float(jnp.max(jnp.abs(out_f32 - ref)))

    # Default path: bf16 matmul operands (v6e/v7x memory-bandwidth win), f32 stats/norm.
    out_bf16 = jax.block_until_ready(transpose_conv_block(x, weight))
    assert out_bf16.shape == (N, out_chans, 2 * H, 2 * W), out_bf16.shape
    assert jnp.allclose(out_bf16, ref, rtol=5e-2, atol=5e-2), \
        float(jnp.max(jnp.abs(out_bf16 - ref)))

    print("KERNEL_OK")
</pallas_src>

<mosaic_0001>
module attributes {stable_mosaic.version = 11 : i64} {
  func.func @_transpose_conv_block_kernel(%arg0: i32, %arg1: i32, %arg2: memref<1x4x256xf32, #tpu.memory_space<vmem>>, %arg3: memref<32x4xf32, #tpu.memory_space<vmem>>, %arg4: memref<1x32x256xf32, #tpu.memory_space<vmem>>) attributes {dimension_semantics = [#tpu.dimension_semantics<parallel>, #tpu.dimension_semantics<parallel>], iteration_bounds = array<i64: 2, 1>, scalar_prefetch = 0 : i64, scratch_operands = 0 : i64, tpu.core_type = #tpu.core_type<tc>, window_params = [{transform_indices = @transform_0, window_bounds = array<i64: 1, 4, 256>}, {transform_indices = @transform_1, window_bounds = array<i64: 32, 4>}, {transform_indices = @transform_2, window_bounds = array<i64: 1, 32, 256>}]} {
    %c0 = arith.constant 0 : index
    %c0_0 = arith.constant 0 : index
    %c0_1 = arith.constant 0 : index
    %0 = vector.load %arg2[%c0, %c0_0, %c0_1] : memref<1x4x256xf32, #tpu.memory_space<vmem>>, vector<1x4x256xf32>
    %1 = vector.shape_cast %0 : vector<1x4x256xf32> to vector<4x256xf32>
    %c0_2 = arith.constant 0 : index
    %c0_3 = arith.constant 0 : index
    %2 = vector.load %arg3[%c0_2, %c0_3] : memref<32x4xf32, #tpu.memory_space<vmem>>, vector<32x4xf32>
    %cst = arith.constant dense<0.000000e+00> : vector<32x256xf32>
    %3 = tpu.matmul %2, %1, %cst {dimension_numbers = #tpu.dot_dimension_numbers<[1], [0], [0], [1], [0, 0, 1, 1], [], []>} : vector<32x4xf32>, vector<4x256xf32>, vector<32x256xf32> -> vector<32x256xf32>
    %cst_4 = arith.constant dense<0.000000e+00> : vector<32xf32>
    %4 = vector.multi_reduction <add>, %3, %cst_4 [1] : vector<32x256xf32> to vector<32xf32>
    %5 = vector.shape_cast %4 : vector<32xf32> to vector<32x1xf32>
    %6 = arith.mulf %3, %3 : vector<32x256xf32>
    %cst_5 = arith.constant dense<0.000000e+00> : vector<32xf32>
    %7 = vector.multi_reduction <add>, %6, %cst_5 [1] : vector<32x256xf32> to vector<32xf32>
    %8 = vector.shape_cast %7 : vector<32xf32> to vector<32x1xf32>
    %9 = vector.extract_strided_slice %5 {offsets = [0, 0], sizes = [8, 1], strides = [1, 1]} : vector<32x1xf32> to vector<8x1xf32>
    %10 = vector.extract_strided_slice %5 {offsets = [8, 0], sizes = [8, 1], strides = [1, 1]} : vector<32x1xf32> to vector<8x1xf32>
    %11 = arith.addf %9, %10 : vector<8x1xf32>
    %12 = vector.extract_strided_slice %5 {offsets = [16, 0], sizes = [8, 1], strides = [1, 1]} : vector<32x1xf32> to vector<8x1xf32>
    %13 = arith.addf %11, %12 : vector<8x1xf32>
    %14 = vector.extract_strided_slice %5 {offsets = [24, 0], sizes = [8, 1], strides = [1, 1]} : vector<32x1xf32> to vector<8x1xf32>
    %15 = arith.addf %13, %14 : vector<8x1xf32>
    %16 = vector.extract_strided_slice %8 {offsets = [0, 0], sizes = [8, 1], strides = [1, 1]} : vector<32x1xf32> to vector<8x1xf32>
    %17 = vector.extract_strided_slice %8 {offsets = [8, 0], sizes = [8, 1], strides = [1, 1]} : vector<32x1xf32> to vector<8x1xf32>
    %18 = arith.addf %16, %17 : vector<8x1xf32>
    %19 = vector.extract_strided_slice %8 {offsets = [16, 0], sizes = [8, 1], strides = [1, 1]} : vector<32x1xf32> to vector<8x1xf32>
    %20 = arith.addf %18, %19 : vector<8x1xf32>
    %21 = vector.extract_strided_slice %8 {offsets = [24, 0], sizes = [8, 1], strides = [1, 1]} : vector<32x1xf32> to vector<8x1xf32>
    %22 = arith.addf %20, %21 : vector<8x1xf32>
    %cst_6 = arith.constant 1.024000e+03 : f32
    %23 = vector.broadcast %cst_6 : f32 to vector<8x1xf32>
    %24 = arith.divf %15, %23 : vector<8x1xf32>
    %cst_7 = arith.constant 1.024000e+03 : f32
    %25 = vector.broadcast %cst_7 : f32 to vector<8x1xf32>
    %26 = arith.divf %22, %25 : vector<8x1xf32>
    %27 = arith.mulf %24, %24 : vector<8x1xf32>
    %28 = arith.subf %26, %27 : vector<8x1xf32>
    %cst_8 = arith.constant 0.000000e+00 : f32
    %29 = vector.broadcast %cst_8 : f32 to vector<8x1xf32>
    %30 = arith.maximumf %28, %29 : vector<8x1xf32>
    %cst_9 = arith.constant 9.99999974E-6 : f32
    %31 = vector.broadcast %cst_9 : f32 to vector<8x1xf32>
    %32 = arith.addf %30, %31 : vector<8x1xf32>
    %33 = math.rsqrt %32 : vector<8x1xf32>
    %34 = tpu.concatenate %24, %24, %24, %24 in 0 : vector<8x1xf32>, vector<8x1xf32>, vector<8x1xf32>, vector<8x1xf32> -> vector<32x1xf32>
    %35 = tpu.concatenate %33, %33, %33, %33 in 0 : vector<8x1xf32>, vector<8x1xf32>, vector<8x1xf32>, vector<8x1xf32> -> vector<32x1xf32>
    %36 = vector.broadcast %34 : vector<32x1xf32> to vector<32x256xf32>
    %37 = arith.subf %3, %36 : vector<32x256xf32>
    %38 = vector.broadcast %35 : vector<32x1xf32> to vector<32x256xf32>
    %39 = arith.mulf %37, %38 : vector<32x256xf32>
    %cst_10 = arith.constant 0.000000e+00 : f32
    %40 = vector.broadcast %cst_10 : f32 to vector<32x256xf32>
    %41 = arith.cmpf oge, %39, %40 : vector<32x256xf32>
    %cst_11 = arith.constant 2.000000e-01 : f32
    %42 = vector.broadcast %cst_11 : f32 to vector<32x256xf32>
    %43 = arith.mulf %42, %39 : vector<32x256xf32>
    %44 = arith.select %41, %39, %43 : vector<32x256xi1>, vector<32x256xf32>
    %c0_12 = arith.constant 0 : index
    %c0_13 = arith.constant 0 : index
    %c0_14 = arith.constant 0 : index
    %45 = vector.load %arg4[%c0_12, %c0_13, %c0_14] : memref<1x32x256xf32, #tpu.memory_space<vmem>>, vector<1x32x256xf32>
    %46 = vector.shape_cast %45 : vector<1x32x256xf32> to vector<32x256xf32>
    %47 = vector.shape_cast %44 : vector<32x256xf32> to vector<1x32x256xf32>
    tpu.vector_store %arg4[%c0_12, %c0_13, %c0_14], %47 {strides = array<i32>} : memref<1x32x256xf32, #tpu.memory_space<vmem>>, vector<1x32x256xf32>,
    return
  }
  func.func @transform_0(%arg0: i32, %arg1: i32) -> (i32, i32, i32) {
    %c0_i32 = arith.constant 0 : i32
    %c0_i32_0 = arith.constant 0 : i32
    %c0_i32_1 = arith.constant 0 : i32
    return %arg0, %c0_i32, %c0_i32_0 : i32, i32, i32
  }
  func.func @transform_1(%arg0: i32, %arg1: i32) -> (i32, i32) {
    %c0_i32 = arith.constant 0 : i32
    %c0_i32_0 = arith.constant 0 : i32
    return %arg1, %c0_i32 : i32, i32
  }
  func.func @transform_2(%arg0: i32, %arg1: i32) -> (i32, i32, i32) {
    %c0_i32 = arith.constant 0 : i32
    %c0_i32_0 = arith.constant 0 : i32
    return %arg0, %arg1, %c0_i32 : i32, i32, i32
  }
}

</mosaic_0001>

<bundles_post_ra>
// kernel: tpu_custom_call.1
= control target key start
LH: loop header
LB: loop body
LE: loop exit
PB: predicated region body
PF: predicated region fallthrough
CT: control target
= control target key end

     0   :  { %7 = vsyncpa [#allocation3], 0  ;;  %s874_s0 = inlined_call_operand.vmem [shape: f32[2,4,256], index: 0, kind: input, shape index: {}]   ;;  %s875_s1 = inlined_call_operand.vmem [shape: f32[32,4], index: 1, kind: input, shape index: {}]   ;;  %s876_s2 = inlined_call_operand.hbm [shape: f32[2,32,256], index: 2, kind: output, shape index: {}]  }
   0x1   :  { %9 = vsyncpa [#allocation3 + $0x1], 0  ;;  %s688_s9 = smov 0   ;;  %s690_s10 = smov 0  }
   0x2   :  { %s692_s11 = smov 0   ;;  %s694_s12 = smov 0  }
   0x3   :  { %s696_s13 = smov 0   ;;  %s698_s14 = smov 0  }
   0x4 LB: > { %s502_s15 = sadd.s32 4294967295, %s666_s14   ;;  %s503_s16 = sadd.s32 4294967294, %s666_s14   ;;  %s666_s14 = sphi %s698_s14, %s15_s14   ;;  %s662_s13 = sphi %s696_s13, %s883_s13   ;;  %s658_s12 = sphi %s694_s12, %s882_s12   ;;  %s654_s11 = sphi %s692_s11, %s881_s11   ;;  %s650_s10 = sphi %s690_s10, %s880_s10   ;;  %s646_s9 = sphi %s688_s9, %s879_s9  }
   0x5   : > { %s27_s17 = sadd.s32 1, %s662_s13  ;;  %s88_s18 = sadd.s32 1, %s654_s11 }
   0x6   : > { %p29_p0 = scmp.ge.s32.totalorder %s27_s17, 2  ;;  %p98_p1 = scmp.ne.s32.totalorder %s654_s11, %s650_s10 }
   0x7   : > { %p99_p2 = scmp.eq.s32.totalorder %s502_s15, 1  ;;  %p104_p3 = scmp.ne.s32.totalorder %s650_s10, %s646_s9 }
   0x8   : > { %s885_s17 = smov (%p29_p0, %s27_s17), 0  ;;  %p105_p5 = scmp.eq.s32.totalorder %s503_s16, 1 }
   0x9   : > { %p728_p4 = por %p99_p2, %p98_p1  ;;  %s83_s20 = ssub.s32 %s662_s13, %s885_s17 }
   0xa   : > { %p507_p6 = scmp.ge.s32.totalorder %s666_s14, 1  ;;  %p86_p7 = scmp.eq.s32.totalorder %s83_s20, 0 }
   0xb   : > { %p735_p8 = por %p105_p5, %p104_p3  ;;  %p140_p9 = scmp.lt.s32.totalorder %s666_s14, 3 }
   0xc   : > { %s741_s22 = scalar_select %p86_p7, %s654_s11, %s88_s18  }
   0xd   : > { %p141_p10 = pnand %p507_p6, %p140_p9 }
   0xe   : > { %p167_p11 = scmp.lt.s32.totalorder (!%p141_p10), %s658_s12, 1  ;;  %s164_s8 = sand.u32 (!%p141_p10), 1, %s650_s10  }
   0xf   : > { %144 = sbr.rel (%p141_p10) target bundleno = 551 (0x227), region = 28  ;;  %s508_s15 = sshll.u32 (!%p141_p10), %s164_s8, 6 }
  0x10   : > { %s523_s16 = sshll.u32 (!%p141_p10), %s658_s12, 10  ;;  %s166_s18 = scalar_lea.vmem (!%p141_p10), [#allocation2], %s508_s15 }
  0x11   : > { %s414_s20 = sshll.u32 (!%p141_p10), %s166_s18, 4  ;;  %s829_s25 = scalar_lea.sflag (!%p141_p10), [#allocation3], %s164_s8  ;;  %s819_s20 = int_to_ptr.vmem [resolvable:$true] %s414_s20 }
  0x12   : > { %s590_s26 = scalar_lea.vmem (!%p141_p10), %s819_s20, 1024 }
  0x13   : > { %p591_p12 = scmp.ne.s32.totalorder (!%p141_p10), %s819_s20, %s590_s26 }
  0x14   : > { %v668_v0 = vmov 0.0   ;;  %s168_s23 = scalar_select %p167_p11, %s658_s12, 1  ;;  %vm199_vm0 = vcmask 1043456   ;;  %v180_v3 = vld [vmem:[%s875_s1] sm:$0xff]  ;;  %vm186_vm1 = vcmask 31744   ;;  %v182_v4 = vld [vmem:[%s875_s1 + $0x10] sm:$0xff] }
  0x15   : > { %268 = vmatprep.mubr.f32.mxu0 %v668_v0  ;;  %280 = vmatprep.mubr.f32.mxu1 %v668_v0  ;;  %v181_v5 = vld [vmem:[%s875_s1 + $0x8] sm:$0xff]  ;;  %v183_v6 = vld [vmem:[%s875_s1 + $0x18] sm:$0xff]  ;;  %v669_v31 = vmov 0   ;;  %p592_p13 = pnand %p591_p12, %p728_p4 }
  0x16   : > { %s522_s24 = sshll.u32 %s168_s23, 3  ;;  %585 = vset.pattern.permute.xlu0 %v669_v31  ;;  %586 = vset.pattern.permute.xlu1 %v669_v31 }
  0x17   : > { %s171_s27 = scalar_lea.vmem %s874_s0, %s522_s24  ;;  %s817_s24 = scalar_lea.hbm %s876_s2, %s523_s16 }
  0x18   : > { %v179_v1 = vld [vmem:[%s171_s27] sm:$0xff]  ;;  %p593_p0 = pneg %p592_p13  ;;  %s670_s27 = smov [#allocation2]  }
  0x19   : > { %v185_v2 = vcombine.high %v179_v1, %v179_v1  ;;  %s594_s28 = sshll.u32 %s670_s27, 4  ;;  %s595_s28 = int_to_ptr.vmem [resolvable:$false] %s594_s28 }
  0x1a   : > { %s596_s29 = scalar_lea.vmem %s595_s28, 2048  ;;  %p597_p1 = scmp.lt.s32.totalorder %s819_s20, %s595_s28 }
  0x1b   : > { %511 = vmatprep.subr.msk.mxu0 %vm199_vm0, %v185_v2  ;;  %524 = vmatprep.subr.msk.mxu1 %vm199_vm0, %v185_v2  ;;  %p598_p2 = scmp.lt.s32.totalorder %s596_s29, %s590_s26 }
  0x1c   : > { %512 = vmatpush1.msk.msra.mxu0 %vm199_vm0, %v179_v1  ;;  %525 = vmatpush1.msk.msra.mxu1 %vm199_vm0, %v179_v1 }
  0x1d   : > { %513 = vmatmul.mubr.msk.f32.vlgmr.msra.gmra.mxu0 %vm186_vm1, %v180_v3  ;;  %515 = vmatmul.mubr.msk.f32.vlgmr.msra.gmra.mxu1 %vm186_vm1, %v182_v4  ;;  %p599_p3 = por %p598_p2, %p597_p1 }
  0x1e   : > { %274 = vmatprep.mubr.f32.mxu0 %v668_v0  ;;  %286 = vmatprep.mubr.f32.mxu1 %v668_v0 }
  0x1f   : > { %p600_p5 = pnand %p599_p3, %p593_p0 }
  0x21   : > { %514 = vmatmul.mubr.msk.f32.gmra.mxu0 %vm186_vm1, %v181_v5  ;;  %516 = vmatmul.mubr.msk.f32.gmra.mxu1 %vm186_vm1, %v183_v6 }
  0xdd   : > { %v760_v7 = vpop.f32.mrf.mxu0  ;;  %v762_v8 = vpop.f32.mrf.mxu1 }
  0xde   : > { %v305_v16 = vmul.f32 %v760_v7, %v760_v7  ;;  %v309_v24 = vmul.f32 %v762_v8, %v762_v8 }
  0xdf   : > { %v764_v9 = vpop.f32.mrf.mxu0  ;;  %v766_v10 = vpop.f32.mrf.mxu1 }
  0xe0   : > { %v299_v11 = vadd.f32 %v766_v10, %v762_v8  ;;  %v293_v12 = vadd.f32 %v764_v9, %v760_v7  ;;  %v306_v13 = vmul.f32 %v764_v9, %v764_v9  ;;  %v310_v28 = vmul.f32 %v766_v10, %v766_v10 }
  0xe1   : > { %v774_v14 = vpop.f32.mrf.mxu0  ;;  %v776_v15 = vpop.f32.mrf.mxu1 }
  0xe2   : > { %300 = vadd.xlane.f32.xlu1 %v299_v11  ;;  %294 = vadd.xlane.f32.xlu0 %v293_v12  ;;  %v313_v20 = vadd.f32 %v306_v13, %v305_v16  ;;  %v307_v23 = vmul.f32 %v774_v14, %v774_v14  ;;  %v311_v27 = vmul.f32 %v776_v15, %v776_v15 }
  0xe3   : > { %v780_v17 = vpop.f32.mrf.mxu0  ;;  %v782_v18 = vpop.f32.mrf.mxu1  ;;  %v319_v30 = vadd.f32 %v310_v28, %v309_v24 }
  0xe4   : > { %v308_v19 = vmul.f32 %v780_v17, %v780_v17  ;;  %v296_v21 = vadd.f32 %v780_v17, %v774_v14  ;;  %v302_v22 = vadd.f32 %v782_v18, %v776_v15  ;;  %v312_v25 = vmul.f32 %v782_v18, %v782_v18 }
  0xe6   : > { %314 = vadd.xlane.f32.xlu1 %v313_v20  ;;  %297 = vadd.xlane.f32.xlu0 %v296_v21  ;;  %v316_v26 = vadd.f32 %v308_v19, %v307_v23  ;;  %v322_v29 = vadd.f32 %v312_v25, %v311_v27 }
  0xea   : > { %303 = vadd.xlane.f32.xlu1 %v302_v22  ;;  %317 = vadd.xlane.f32.xlu0 %v316_v26 }
  0xee   : > { %323 = vadd.xlane.f32.xlu1 %v322_v29  ;;  %320 = vadd.xlane.f32.xlu0 %v319_v30 }
 0x16b   : > { %v301_v32 = vpop.xlane.xlu1 %300  ;;  %v295_v33 = vpop.xlane.xlu0 %294 }
 0x16f   : > { %v315_v34 = vpop.xlane.xlu1 %314  ;;  %v298_v35 = vpop.xlane.xlu0 %297 }
 0x170   : > { %v325_v36 = vadd.f32 %v298_v35, %v295_v33 }
 0x172   : > { %v326_v37 = vadd.f32 %v325_v36, %v301_v32 }
 0x173   : > { %v304_v38 = vpop.xlane.xlu1 %303  ;;  %v318_v39 = vpop.xlane.xlu0 %317 }
 0x174   : > { %v327_v40 = vadd.f32 %v326_v37, %v304_v38  ;;  %v328_v42 = vadd.f32 %v318_v39, %v315_v34 }
 0x176   : > { %v332_v41 = vmul.f32 0.0009765625, %v327_v40 }
 0x177   : > { %v321_v43 = vpop.xlane.xlu0 %320  ;;  %v324_v45 = vpop.xlane.xlu1 %323 }
 0x178   : > { %v329_v44 = vadd.f32 %v328_v42, %v321_v43  ;;  %341 = vperm.xlu0 %585, %v332_v41   ;;  %v334_v47 = vmul.f32 %v332_v41, %v332_v41 }
 0x17a   : > { %v330_v46 = vadd.f32 %v329_v44, %v324_v45 }
 0x17c   : > { %v333_v48 = vmul.f32 0.0009765625, %v330_v46 }
 0x17e   : > { %v335_v49 = vsub.f32 %v333_v48, %v334_v47 }
 0x180   : > { %v336_v50 = vmax.f32 %v335_v49, 0.0 }
 0x182   : > { %v337_v51 = vadd.f32 1e-05, %v336_v50 }
 0x184   : > { %588 = vrsqrt.f32 %v337_v51 }
 0x191   : > { %v589_v52 = vpop.eup %588 }
 0x192   : > { %354 = vperm.xlu1 %586, %v589_v52  }
 0x1f3   : > { %v342_v53 = vpop.permute.xlu0 %341 }
 0x1f4   : > { %v344_v54 = vsub.f32 %v760_v7, %v342_v53  ;;  %v345_v55 = vsub.f32 %v764_v9, %v342_v53  ;;  %v346_v56 = vsub.f32 %v774_v14, %v342_v53  ;;  %v347_v57 = vsub.f32 %v780_v17, %v342_v53 }
 0x1f5   : > { %v348_v58 = vsub.f32 %v762_v8, %v342_v53  ;;  %v349_v59 = vsub.f32 %v766_v10, %v342_v53  ;;  %v350_v60 = vsub.f32 %v776_v15, %v342_v53  ;;  %v351_v61 = vsub.f32 %v782_v18, %v342_v53 }
 0x20d   : > { %v355_v62 = vpop.permute.xlu1 %354 }
 0x20e   : > { %v357_v63 = vmul.f32 %v355_v62, %v344_v54  ;;  %v358_v0 = vmul.f32 %v355_v62, %v345_v55  ;;  %v359_v1 = vmul.f32 %v355_v62, %v346_v56  ;;  %v360_v2 = vmul.f32 %v355_v62, %v347_v57 }
 0x20f   : > { %v361_v3 = vmul.f32 %v355_v62, %v348_v58  ;;  %v362_v4 = vmul.f32 %v355_v62, %v349_v59  ;;  %v363_v5 = vmul.f32 %v355_v62, %v350_v60  ;;  %v364_v6 = vmul.f32 %v355_v62, %v351_v61 }
 0x210   : > { %vm365_vm2 = vcmp.ge.f32.partialorder %v357_v63, 0.0  ;;  %vm366_vm3 = vcmp.ge.f32.partialorder %v358_v0, 0.0  ;;  %vm367_vm4 = vcmp.ge.f32.partialorder %v359_v1, 0.0  ;;  %vm368_vm5 = vcmp.ge.f32.partialorder %v360_v2, 0.0 }
 0x211   : > { %vm369_vm6 = vcmp.ge.f32.partialorder %v361_v3, 0.0  ;;  %vm370_vm7 = vcmp.ge.f32.partialorder %v362_v4, 0.0  ;;  %vm371_vm8 = vcmp.ge.f32.partialorder %v363_v5, 0.0  ;;  %vm372_vm9 = vcmp.ge.f32.partialorder %v364_v6, 0.0 }
 0x212   : > { %v373_v7 = vmul.f32 0.2, %v357_v63  ;;  %v374_v8 = vmul.f32 0.2, %v358_v0  ;;  %v375_v9 = vmul.f32 0.2, %v359_v1 }
 0x213   : > { %v376_v10 = vmul.f32 0.2, %v360_v2  ;;  %v377_v11 = vmul.f32 0.2, %v361_v3  ;;  %v378_v12 = vmul.f32 0.2, %v362_v4 }
 0x214   : > { %v379_v13 = vmul.f32 0.2, %v363_v5  ;;  %v380_v14 = vmul.f32 0.2, %v364_v6  ;;  %v381_v15 = vsel %vm365_vm2, %v357_v63, %v373_v7  ;;  %v382_v16 = vsel %vm366_vm3, %v358_v0, %v374_v8 }
 0x215   : > { %v383_v17 = vsel %vm367_vm4, %v359_v1, %v375_v9  ;;  %v384_v18 = vsel %vm368_vm5, %v360_v2, %v376_v10  ;;  %v385_v19 = vsel %vm369_vm6, %v361_v3, %v377_v11  ;;  %v386_v20 = vsel %vm370_vm7, %v362_v4, %v378_v12  ;;  %389 = vst [vmem:[%s166_s18] sm:$0xff] %v381_v15 }
 0x216   : > { %390 = vst [vmem:[%s166_s18 + $0x8] sm:$0xff] %v382_v16  ;;  %v387_v21 = vsel %vm371_vm8, %v363_v5, %v379_v13  ;;  %v388_v22 = vsel %vm372_vm9, %v364_v6, %v380_v14  ;;  %391 = vst [vmem:[%s166_s18 + $0x10] sm:$0xff] %v383_v17 }
 0x217   : > { %392 = vst [vmem:[%s166_s18 + $0x18] sm:$0xff] %v384_v18  ;;  %393 = vst [vmem:[%s166_s18 + $0x20] sm:$0xff] %v385_v19 }
 0x218   : > { %394 = vst [vmem:[%s166_s18 + $0x28] sm:$0xff] %v386_v20  ;;  %395 = vst [vmem:[%s166_s18 + $0x30] sm:$0xff] %v387_v21 }
 0x219   : > { %396 = vst [vmem:[%s166_s18 + $0x38] sm:$0xff] %v388_v22 }
 0x21a   : > { %603 = shalt.err (!%p600_p5)
}
 0x21b   : > { %s604_s30 = scalar_lea.hbm %s817_s24, 1024  ;;  %s608_s5 = scalar_lea.hbm %s876_s2, 2048 }
 0x21c   : > { %p605_p6 = scmp.ne.s32.totalorder %s817_s24, %s604_s30  ;;  %p609_p10 = scmp.lt.s32.totalorder %s817_s24, %s876_s2 }
 0x21d   : > { %p610_p11 = scmp.lt.s32.totalorder %s608_s5, %s604_s30 }
 0x21e   : > { %p606_p7 = pnand %p605_p6, %p728_p4 }
 0x21f   : > { %p611_p12 = por %p610_p11, %p609_p10 }
 0x220   : > { %p607_p9 = pneg %p606_p7 }
 0x222   : > { %p612_p13 = pnand %p611_p12, %p607_p9 }
 0x224   : > { %615 = shalt.err (!%p612_p13)
}
 0x225   : > { %s671_s8 = smov 256   ;;  %s672_s15 = smov 16  }
 0x226   : > { %526 = dma.vmem_to_hbm [thread:$0]  (%p728_p4), %s819_s20, 1024, %s817_s24, %s829_s25, %s671_s8, %s671_s8, %s672_s15  }
 0x227 PF: > { %p532_p0 = scmp.ge.s32.totalorder %s666_s14, 2  ;;  %s429_s16 = sand.u32 1, %s646_s9  }
 0x228   : > { %s430_s18 = scalar_lea.sflag [#allocation3], %s429_s16 }
 0x229   : > { %p529_p1 = pnand %p532_p0, %p735_p8 }
 0x22b   : > { %p530_p2 = pneg %p529_p1 }
 0x22d   : > { %641 = dma.done.wait (%p530_p2), %s430_s18, 1024  }
 0x22e   : > { %643 = vsyncadd (%p530_p2), %s430_s18, 4294966272  ;;  %s15_s14 = sadd.s32 1, %s666_s14   ;;  %s879_s9 = smov %s650_s10 }
 0x22f   : > { %p12_p3 = scmp.ge.s32.totalorder %s15_s14, 4   ;;  %s880_s10 = smov %s654_s11 }
 0x230   : > { %s881_s11 = smov %s741_s22  ;;  %s882_s12 = smov %s662_s13 }
 0x231   : > { %s883_s13 = smov %s885_s17  ;;  %14 = sbr.rel (!%p12_p3) target bundleno = 4 (0x4), region = 66 }
 0x236   :  { %435 = vsyncpa [#allocation3], 1 }
 0x237   :  { %437 = vsyncpa [#allocation3 + $0x1], 1 }

</bundles_post_ra>
